<compile_context>
chip_gen: v7x
topology: tpu7x:2x2x1
jax: 0.10.0
libtpu: 0.0.40
codegen_flags: <defaults>
</compile_context>

<pallas_src>
import functools

import jax
import jax.numpy as jnp
from jax.experimental import pallas as pl
from jax.experimental.pallas import tpu as pltpu


# ------------------------------ helpers -------------------------------------
def _round_up(a, b):
    return ((a + b - 1) // b) * b


def _fit_tile(desired, total):
    """Largest multiple of 128 that is <= desired and divides `total`
    (`total` is itself a multiple of 128)."""
    t = max(128, min(desired, total))
    t -= t % 128
    t = max(t, 128)
    while total % t:
        t -= 128
    return t


def _device_config():
    """Generation-aware defaults (VMEM limit + tile sizes)."""
    vmem_phys = 128 * 1024 * 1024
    try:
        vmem_phys = int(pltpu.get_tpu_info().vmem_capacity_bytes)
    except Exception:
        pass
    if vmem_phys <= 64 * 1024 * 1024:
        # v7x-class: 64 MiB per TC -> leave headroom for compiler scratch.
        return {"vmem_limit": 48 * 1024 * 1024, "tm": 512, "tk": 2048}
    # v5e / v6e: 128 MiB physical VMEM -> bigger tiles amortize per-step cost.
    return {"vmem_limit": 96 * 1024 * 1024, "tm": 1024, "tk": 2048}


def _choose_tiles(np_, hp, cp, cfg):
    """VMEM- and N-aware tile choice (row block tm, adj column tile tk)."""
    tm = _fit_tile(cfg["tm"], np_)
    tk = _fit_tile(cfg["tk"], np_)
    budget = int(cfg["vmem_limit"] * 0.75)

    def vmem_est(tm_, tk_):
        adj = 3 * tm_ * tk_ * 2                # Buffered(3) adj tile (bf16)
        hop = 2 * tk_ * hp * 2                 # res_lin / res1 k-tile (bf16)
        rows = 2 * tm_ * hp * (4 + 2)          # res_lin f32 + res1 bf16 rows
        wts = (hp * hp + hp * cp) * 2 + (hp + cp) * 4
        acc = tm_ * hp * 4                     # f32 scratch accumulator
        out = 2 * tm_ * cp * 4                 # lane-dense output block
        return adj + hop + rows + wts + acc + out

    while vmem_est(tm, tk) > budget and tk > 256:
        tk = _fit_tile(tk // 2, np_)
    while vmem_est(tm, tk) > budget and tm > 128:
        tm = _fit_tile(tm // 2, np_)
    return tm, tk


def _maybe_buffered_spec(block_shape, index_map, buffers=3):
    """adj streaming is the critical DMA -> ask for a deeper pipeline if this
    jax version supports pipeline_mode; otherwise fall back to default."""
    try:
        return pl.BlockSpec(block_shape, index_map,
                            pipeline_mode=pl.Buffered(buffers))
    except TypeError:
        return pl.BlockSpec(block_shape, index_map)


# ----------------------------- pass 0 kernel --------------------------------
def _lin_kernel(x_ref, w_lin_ref, b_lin_ref, rl_f32_ref, rl_b16_ref):
    # res_lin for one row block (bf16 MXU operands, f32 accumulation + bias)
    rl = jnp.dot(x_ref[...], w_lin_ref[...],
                 preferred_element_type=jnp.float32) + b_lin_ref[...]
    rl_f32_ref[...] = rl
    rl_b16_ref[...] = rl.astype(jnp.bfloat16)


# ----------------------------- pass 1 kernel --------------------------------
def _hop1_kernel(adj_ref, rl_b16_ref, res1_b16_ref, acc_ref):
    k = pl.program_id(1)

    @pl.when(k == 0)
    def _():
        acc_ref[...] = jnp.zeros_like(acc_ref)

    # res1[i] += adj[i, k] @ res_lin[k]
    acc_ref[...] += jnp.dot(adj_ref[...], rl_b16_ref[...],
                            preferred_element_type=jnp.float32)

    @pl.when(k == pl.num_programs(1) - 1)
    def _():
        res1_b16_ref[...] = acc_ref[...].astype(jnp.bfloat16)


# ----------------------------- pass 2 kernel --------------------------------
def _hop2_epilogue_kernel(adj_ref, res1_k_ref, rl_row_ref, res1_row_ref,
                          w_mlp_ref, b_mlp_ref, w_cls_ref, b_cls_ref, gate_ref,
                          out_ref, acc_ref, *, num_classes):
    k = pl.program_id(1)

    @pl.when(k == 0)
    def _():
        acc_ref[...] = jnp.zeros_like(acc_ref)

    # res2[i] += adj[i, k] @ res1[k]
    acc_ref[...] += jnp.dot(adj_ref[...], res1_k_ref[...],
                            preferred_element_type=jnp.float32)

    @pl.when(k == pl.num_programs(1) - 1)
    def _():
        res2 = acc_ref[...]
        # gated fusion; gate sigmoided host-side, scalar reads from SMEM
        mix = (gate_ref[0] * rl_row_ref[...]
               + gate_ref[1] * res1_row_ref[...].astype(jnp.float32)
               + gate_ref[2] * res2)

        # MLP(hid, hid, act=ReLU)
        h = jnp.dot(mix.astype(jnp.bfloat16), w_mlp_ref[...],
                    preferred_element_type=jnp.float32) + b_mlp_ref[...]
        h = jnp.maximum(h, 0.0)

        # classifier; padded columns masked out before the softmax
        logits = jnp.dot(h.astype(jnp.bfloat16), w_cls_ref[...],
                         preferred_element_type=jnp.float32) + b_cls_ref[...]
        col = jax.lax.broadcasted_iota(jnp.int32, logits.shape, 1)
        logits = jnp.where(col < num_classes, logits, jnp.float32(-1e30))

        # log_softmax over real classes (padded columns contribute exp(.)=0)
        m = jnp.max(logits, axis=1, keepdims=True)
        shifted = logits - m
        lse = jnp.log(jnp.sum(jnp.exp(shifted), axis=1, keepdims=True))
        out_ref[...] = (shifted - lse).astype(out_ref.dtype)


# ------------------------------- wrapper -------------------------------------
def modelop_forward(x, adj, params, *, block_rows=None, block_cols=None,
                    vmem_limit_bytes=None):
    f32, bf16 = jnp.float32, jnp.bfloat16

    N, F = x.shape
    H = params["w_lin"].shape[1]
    C = params["w_cls"].shape[1]

    cfg = _device_config()
    if vmem_limit_bytes is None:
        vmem_limit_bytes = cfg["vmem_limit"]

    # lane-dense padded dims
    Hp = _round_up(H, 128)
    CP = _round_up(C, 128)
    Np = _round_up(N, 128)

    tm, tk = _choose_tiles(Np, Hp, CP, cfg)
    if block_rows is not None:
        tm = block_rows
    if block_cols is not None:
        tk = block_cols
    assert Np % tm == 0 and Np % tk == 0, "tiles must divide the padded N"

    # ---- host-side prep -----------------------------------------------------
    # adjacency: accept a pre-cast bf16 adj (it is static across GNN calls);
    # pad rows/cols with zeros so tiles stay (8,128)-aligned for any N.
    adj_b = adj if adj.dtype == bf16 else adj.astype(bf16)
    if Np != N:
        adj_b = jnp.zeros((Np, Np), bf16).at[:N, :N].set(adj_b)
    # TODO(synk): on v7x, storing adj in fp8 (e4m3) would roughly halve the
    # dominant HBM traffic of both hops; kept bf16 for cross-generation safety.

    x_b = x.astype(bf16)
    if Np != N:
        x_b = jnp.zeros((Np, F), bf16).at[:N, :].set(x_b)

    w_lin_p = jnp.zeros((F, Hp), f32).at[:, :H].set(params["w_lin"]).astype(bf16)
    b_lin_p = jnp.zeros((1, Hp), f32).at[:, :H].set(params["b_lin"])
    w_mlp_p = jnp.zeros((Hp, Hp), f32).at[:H, :H].set(params["w_mlp"]).astype(bf16)
    b_mlp_p = jnp.zeros((1, Hp), f32).at[:, :H].set(params["b_mlp"])
    w_cls_p = jnp.zeros((Hp, CP), f32).at[:H, :C].set(params["w_cls"]).astype(bf16)
    b_cls_p = jnp.zeros((1, CP), f32).at[:, :C].set(params["b_cls"])
    gate_sig = jax.nn.sigmoid(params["gate"].astype(f32)).reshape(3)

    cparams_rows = pltpu.CompilerParams(
        dimension_semantics=("parallel",), vmem_limit_bytes=vmem_limit_bytes)
    cparams_hop = pltpu.CompilerParams(
        dimension_semantics=("parallel", "arbitrary"),
        vmem_limit_bytes=vmem_limit_bytes)

    nb_i = Np // tm
    nb_k = Np // tk

    # ---- pass 0: res_lin = x @ W_lin + b_lin (computed once) ----------------
    res_lin_f32, res_lin_b16 = pl.pallas_call(
        _lin_kernel,
        out_shape=(jax.ShapeDtypeStruct((Np, Hp), f32),
                   jax.ShapeDtypeStruct((Np, Hp), bf16)),
        grid_spec=pltpu.PrefetchScalarGridSpec(
            num_scalar_prefetch=0,
            grid=(nb_i,),
            in_specs=[
                pl.BlockSpec((tm, F), lambda i: (i, 0)),     # x row block
                pl.BlockSpec((F, Hp), lambda i: (0, 0)),     # W_lin (resident)
                pl.BlockSpec((1, Hp), lambda i: (0, 0)),     # b_lin
            ],
            out_specs=[
                pl.BlockSpec((tm, Hp), lambda i: (i, 0)),    # res_lin f32
                pl.BlockSpec((tm, Hp), lambda i: (i, 0)),    # res_lin bf16
            ],
        ),
        compiler_params=cparams_rows,
    )(x_b, w_lin_p, b_lin_p)

    # ---- pass 1: res1 = adj @ res_lin (k-tiled reduction, scratch acc) ------
    res1_b16 = pl.pallas_call(
        _hop1_kernel,
        out_shape=jax.ShapeDtypeStruct((Np, Hp), bf16),
        grid_spec=pltpu.PrefetchScalarGridSpec(
            num_scalar_prefetch=0,
            grid=(nb_i, nb_k),
            in_specs=[
                _maybe_buffered_spec((tm, tk), lambda i, k: (i, k)),  # adj tile
                pl.BlockSpec((tk, Hp), lambda i, k: (k, 0)),          # res_lin k-tile
            ],
            out_specs=pl.BlockSpec((tm, Hp), lambda i, k: (i, 0)),
            scratch_shapes=[pltpu.VMEM((tm, Hp), f32)],
        ),
        compiler_params=cparams_hop,
    )(adj_b, res_lin_b16)

    # ---- pass 2: res2 = adj @ res1, gate mix, MLP, classifier, log_softmax --
    out_pad = pl.pallas_call(
        functools.partial(_hop2_epilogue_kernel, num_classes=C),
        out_shape=jax.ShapeDtypeStruct((Np, CP), f32),
        grid_spec=pltpu.PrefetchScalarGridSpec(
            num_scalar_prefetch=0,
            grid=(nb_i, nb_k),
            in_specs=[
                _maybe_buffered_spec((tm, tk), lambda i, k: (i, k)),  # adj tile
                pl.BlockSpec((tk, Hp), lambda i, k: (k, 0)),          # res1 k-tile
                pl.BlockSpec((tm, Hp), lambda i, k: (i, 0)),          # res_lin rows f32
                pl.BlockSpec((tm, Hp), lambda i, k: (i, 0)),          # res1 rows bf16
                pl.BlockSpec((Hp, Hp), lambda i, k: (0, 0)),          # W_mlp
                pl.BlockSpec((1, Hp), lambda i, k: (0, 0)),           # b_mlp
                pl.BlockSpec((Hp, CP), lambda i, k: (0, 0)),          # W_cls padded
                pl.BlockSpec((1, CP), lambda i, k: (0, 0)),           # b_cls padded
                pl.BlockSpec(memory_space=pltpu.MemorySpace.SMEM),    # sig(gate)
            ],
            out_specs=pl.BlockSpec((tm, CP), lambda i, k: (i, 0)),
            scratch_shapes=[pltpu.VMEM((tm, Hp), f32)],
        ),
        compiler_params=cparams_hop,
    )(adj_b, res1_b16, res_lin_f32, res1_b16,
      w_mlp_p, b_mlp_p, w_cls_p, b_cls_p, gate_sig)

    return out_pad[:N, :C]


# ------------------------------ references -----------------------------------
def modelop_reference(x, adj, params, matmul_dtype=jnp.float32):
    def mm(a, b):
        return jnp.dot(a.astype(matmul_dtype), b.astype(matmul_dtype),
                       preferred_element_type=jnp.float32)
    res_lin = mm(x, params["w_lin"]) + params["b_lin"]
    res1 = mm(adj, res_lin)
    res2 = mm(adj, res1)
    g = jax.nn.sigmoid(params["gate"])
    mix = g[0, 0] * res_lin + g[0, 1] * res1 + g[0, 2] * res2
    h = jnp.maximum(mm(mix, params["w_mlp"]) + params["b_mlp"], 0.0)
    logits = mm(h, params["w_cls"]) + params["b_cls"]
    return jax.nn.log_softmax(logits, axis=1)


def make_params(key, feat_dim, hid_dim, num_classes):
    ks = jax.random.split(key, 7)
    return {
        "w_lin": jax.random.normal(ks[0], (feat_dim, hid_dim), jnp.float32)
                 * (1.0 / jnp.sqrt(feat_dim)),
        "b_lin": jax.random.normal(ks[1], (1, hid_dim), jnp.float32) * 0.01,
        "w_mlp": jax.random.normal(ks[2], (hid_dim, hid_dim), jnp.float32)
                 * (1.0 / jnp.sqrt(hid_dim)),
        "b_mlp": jax.random.normal(ks[3], (1, hid_dim), jnp.float32) * 0.01,
        "w_cls": jax.random.normal(ks[4], (hid_dim, num_classes), jnp.float32)
                 * (1.0 / jnp.sqrt(hid_dim)),
        "b_cls": jax.random.normal(ks[5], (1, num_classes), jnp.float32) * 0.01,
        # self.gate = 1e-5 * randn(_numP); _numP = 1 + 2 prop layers = 3
        "gate": 1e-5 * jax.random.normal(ks[6], (1, 3), jnp.float32),
    }


def make_norm_adj(key, n):
    # symmetric binary adjacency + self loops, GCN-style D^-1/2 A D^-1/2
    a = (jax.random.uniform(key, (n, n)) < 0.15).astype(jnp.float32)
    a = jnp.maximum(a, a.T)
    a = a + jnp.eye(n, dtype=jnp.float32)
    d = jnp.sum(a, axis=1)
    d_inv_sqrt = 1.0 / jnp.sqrt(d)
    return a * d_inv_sqrt[:, None] * d_inv_sqrt[None, :]


# TODO(synk): SplineFeaturePropagation / SAGEFeaturePropagation (prop_type 2/3)
# are not exercised by the chosen genotype; sparse spline-conv message passing
# has no clean dense Pallas mapping at this scale and is left unimplemented.

if __name__ == "__main__":
    N, FEAT, HID, CLASSES = 64, 32, 32, 8

    root = jax.random.PRNGKey(0)
    k_x, k_adj, k_par = jax.random.split(root, 3)

    x = jax.random.normal(k_x, (N, FEAT), jnp.float32)
    adj = make_norm_adj(k_adj, N)
    params = make_params(k_par, FEAT, HID, CLASSES)

    out = modelop_forward(x, adj, params)
    out = jax.block_until_ready(out)
    assert out.shape == (N, CLASSES)

    # check vs a bf16-matmul/f32-accum reference (same arithmetic regime;
    # res1 is additionally bf16-rounded once in the kernel's gate mix)
    ref_bf16 = modelop_reference(x, adj, params, matmul_dtype=jnp.bfloat16)
    assert jnp.allclose(out, ref_bf16, atol=5e-3, rtol=5e-3), "mismatch vs bf16 ref"

    # loose sanity check vs the pure-f32 reference (bf16 MXU introduces ~1e-2)
    ref_f32 = modelop_reference(x, adj, params, matmul_dtype=jnp.float32)
    assert jnp.allclose(out, ref_f32, atol=1e-1, rtol=1e-1), "mismatch vs f32 ref"

    print("KERNEL_OK")
</pallas_src>

<mosaic_0001>
module attributes {stable_mosaic.version = 11 : i64} {
  func.func @_lin_kernel(%arg0: i32, %arg1: memref<128x32xbf16, #tpu.memory_space<vmem>>, %arg2: memref<32x128xbf16, #tpu.memory_space<vmem>>, %arg3: memref<1x128xf32, #tpu.memory_space<vmem>>, %arg4: memref<128x128xf32, #tpu.memory_space<vmem>>, %arg5: memref<128x128xbf16, #tpu.memory_space<vmem>>) attributes {dimension_semantics = [#tpu.dimension_semantics<parallel>], iteration_bounds = array<i64: 1>, scalar_prefetch = 0 : i64, scratch_operands = 0 : i64, tpu.core_type = #tpu.core_type<tc>, window_params = [{transform_indices = @transform_0, window_bounds = array<i64: 128, 32>}, {pipeline_mode = #tpu.pipeline_mode<synchronous>, transform_indices = @transform_1, window_bounds = array<i64: 32, 128>}, {pipeline_mode = #tpu.pipeline_mode<synchronous>, transform_indices = @transform_2, window_bounds = array<i64: 1, 128>}, {transform_indices = @transform_3, window_bounds = array<i64: 128, 128>}, {transform_indices = @transform_4, window_bounds = array<i64: 128, 128>}]} {
    %c0 = arith.constant 0 : index
    %c0_0 = arith.constant 0 : index
    %0 = vector.load %arg1[%c0, %c0_0] : memref<128x32xbf16, #tpu.memory_space<vmem>>, vector<128x32xbf16>
    %c0_1 = arith.constant 0 : index
    %c0_2 = arith.constant 0 : index
    %1 = vector.load %arg2[%c0_1, %c0_2] : memref<32x128xbf16, #tpu.memory_space<vmem>>, vector<32x128xbf16>
    %cst = arith.constant dense<0.000000e+00> : vector<128x128xf32>
    %2 = tpu.matmul %0, %1, %cst {dimension_numbers = #tpu.dot_dimension_numbers<[1], [0], [0], [1], [0, 0, 1, 1], [], []>} : vector<128x32xbf16>, vector<32x128xbf16>, vector<128x128xf32> -> vector<128x128xf32>
    %c0_3 = arith.constant 0 : index
    %c0_4 = arith.constant 0 : index
    %3 = vector.load %arg3[%c0_3, %c0_4] : memref<1x128xf32, #tpu.memory_space<vmem>>, vector<1x128xf32>
    %4 = vector.broadcast %3 : vector<1x128xf32> to vector<128x128xf32>
    %5 = arith.addf %2, %4 : vector<128x128xf32>
    %c0_5 = arith.constant 0 : index
    %c0_6 = arith.constant 0 : index
    %6 = vector.load %arg4[%c0_5, %c0_6] : memref<128x128xf32, #tpu.memory_space<vmem>>, vector<128x128xf32>
    tpu.vector_store %arg4[%c0_5, %c0_6], %5 {strides = array<i32>} : memref<128x128xf32, #tpu.memory_space<vmem>>, vector<128x128xf32>,
    %7 = arith.truncf %5 : vector<128x128xf32> to vector<128x128xbf16>
    %c0_7 = arith.constant 0 : index
    %c0_8 = arith.constant 0 : index
    %8 = vector.load %arg5[%c0_7, %c0_8] : memref<128x128xbf16, #tpu.memory_space<vmem>>, vector<128x128xbf16>
    tpu.vector_store %arg5[%c0_7, %c0_8], %7 {strides = array<i32>} : memref<128x128xbf16, #tpu.memory_space<vmem>>, vector<128x128xbf16>,
    return
  }
  func.func @transform_0(%arg0: i32) -> (i32, i32) {
    %c0_i32 = arith.constant 0 : i32
    %c0_i32_0 = arith.constant 0 : i32
    return %arg0, %c0_i32 : i32, i32
  }
  func.func @transform_1(%arg0: i32) -> (i32, i32) {
    %c0_i32 = arith.constant 0 : i32
    %c0_i32_0 = arith.constant 0 : i32
    %c0_i32_1 = arith.constant 0 : i32
    return %c0_i32, %c0_i32_0 : i32, i32
  }
  func.func @transform_2(%arg0: i32) -> (i32, i32) {
    %c0_i32 = arith.constant 0 : i32
    %c0_i32_0 = arith.constant 0 : i32
    %c0_i32_1 = arith.constant 0 : i32
    return %c0_i32, %c0_i32_0 : i32, i32
  }
  func.func @transform_3(%arg0: i32) -> (i32, i32) {
    %c0_i32 = arith.constant 0 : i32
    %c0_i32_0 = arith.constant 0 : i32
    return %arg0, %c0_i32 : i32, i32
  }
  func.func @transform_4(%arg0: i32) -> (i32, i32) {
    %c0_i32 = arith.constant 0 : i32
    %c0_i32_0 = arith.constant 0 : i32
    return %arg0, %c0_i32 : i32, i32
  }
}

</mosaic_0001>

<bundles_post_ra>
// kernel: tpu_custom_call.1
= control target key start
LH: loop header
LB: loop body
LE: loop exit
PB: predicated region body
PF: predicated region fallthrough
CT: control target
= control target key end

     0   :  { %10 = vsyncpa [#allocation3], 0  ;;  %s790_s0 = inlined_call_operand.hbm [shape: bf16[128,32], index: 0, kind: input, shape index: {}]   ;;  %s791_s1 = inlined_call_operand.hbm [shape: bf16[32,128], index: 1, kind: input, shape index: {}]   ;;  %s792_s2 = inlined_call_operand.hbm [shape: f32[1,128], index: 2, kind: input, shape index: {}]   ;;  %s793_s3 = inlined_call_operand.hbm [shape: f32[128,128], index: 3, kind: output, shape index: {0}]   ;;  %s794_s4 = inlined_call_operand.hbm [shape: bf16[128,128], index: 4, kind: output, shape index: {1}]  }
   0x1   :  { %11 = vsyncpa [#allocation6], 0 }
   0x2   :  { %12 = vsyncpa [#allocation4], 0 }
   0x3   :  { %13 = vsyncpa [#allocation10], 0  ;;  %s658_s15 = smov [#allocation5]   ;;  %s659_s17 = smov [#allocation2]  }
   0x4   :  { %s31_s16 = sshll.u32 %s658_s15, 4  ;;  %s19_s18 = sshll.u32 %s659_s17, 4  ;;  %s32_s16 = int_to_ptr.vmem [resolvable:$true] %s31_s16  ;;  %s692_s18 = int_to_ptr.vmem [resolvable:$true] %s19_s18 }
   0x5   :  { %s540_s21 = scalar_lea.hbm %s791_s1, 256 }
   0x6   :  { %p541_p0 = scmp.ne.s32.totalorder %s791_s1, %s540_s21  ;;  %p544_p1 = scmp.lt.u32.totalorder %s540_s21, %s791_s1 }
   0x8   :  { %p546_p2 = pnand %p544_p1, %p541_p0 }
   0xa   :  { %549 = shalt.err (!%p546_p2)
}
   0xb   :  { %s550_s26 = scalar_lea.vmem %s32_s16, 256  ;;  %p555_p4 = scmp.lt.s32.totalorder %s32_s16, %s32_s16 }
   0xc   :  { %p551_p3 = scmp.ne.s32.totalorder %s32_s16, %s550_s26  ;;  %p556_p5 = scmp.lt.s32.totalorder %s550_s26, %s550_s26 }
   0xe   :  { %p557_p6 = por %p556_p5, %p555_p4 }
  0x10   :  { %p558_p7 = pnand %p557_p6, %p551_p3 }
  0x12   :  { %561 = shalt.err (!%p558_p7)
}
  0x13   :  { %s660_s27 = smov 64   ;;  %s661_s28 = smov 4  }
  0x14   :  { %37 = dma.hbm_to_vmem [thread:$0]  %s791_s1, 256, %s32_s16, [#allocation6], %s660_s27, %s660_s27, %s661_s28  }
  0x15   :  { %s562_s7 = scalar_lea.hbm %s790_s0, 1024 }
  0x16   :  { %p563_p8 = scmp.ne.s32.totalorder %s790_s0, %s562_s7  ;;  %p566_p9 = scmp.lt.u32.totalorder %s562_s7, %s790_s0 }
  0x18   :  { %p568_p10 = pnand %p566_p9, %p563_p8 }
  0x1a   :  { %571 = shalt.err (!%p568_p10)
}
  0x1b   :  { %s572_s12 = scalar_lea.vmem %s692_s18, 1024  ;;  %p577_p12 = scmp.lt.s32.totalorder %s692_s18, %s692_s18 }
  0x1c   :  { %p573_p11 = scmp.ne.s32.totalorder %s692_s18, %s572_s12  ;;  %p578_p13 = scmp.lt.s32.totalorder %s572_s12, %s572_s12 }
  0x1e   :  { %p579_p0 = por %p578_p13, %p577_p12 }
  0x20   :  { %p580_p1 = pnand %p579_p0, %p573_p11 }
  0x22   :  { %583 = shalt.err (!%p580_p1)
}
  0x23   :  { %25 = dma.hbm_to_vmem [thread:$0]  %s790_s0, 1024, %s692_s18, [#allocation3], %s660_s27, %s660_s27, %s661_s28  }
  0x24   :  { %s662_s14 = smov [#allocation7]   ;;  %s584_s19 = scalar_lea.hbm %s792_s2, 16 }
  0x25   :  { %s44_s15 = sshll.u32 %s662_s14, 4  ;;  %p585_p2 = scmp.ne.s32.totalorder %s792_s2, %s584_s19  ;;  %s45_s15 = int_to_ptr.vmem [resolvable:$true] %s44_s15 }
  0x26   :  { %p588_p3 = scmp.lt.u32.totalorder %s584_s19, %s792_s2 }
  0x28   :  { %p590_p4 = pnand %p588_p3, %p585_p2 }
  0x2a   :  { %593 = shalt.err (!%p590_p4)
}
  0x2b   :  { %s594_s24 = scalar_lea.vmem %s45_s15, 16  ;;  %s598_s0 = scalar_lea.vmem %s45_s15, 32 }
  0x2c   :  { %p595_p5 = scmp.ne.s32.totalorder %s45_s15, %s594_s24  ;;  %p599_p6 = scmp.lt.s32.totalorder %s45_s15, %s45_s15 }
  0x2d   :  { %p600_p7 = scmp.lt.s32.totalorder %s598_s0, %s594_s24 }
  0x2f   :  { %p601_p8 = por %p600_p7, %p599_p6 }
  0x31   :  { %p602_p9 = pnand %p601_p8, %p595_p5 }
  0x33   :  { %605 = shalt.err (!%p602_p9)
}
  0x34   :  { %47 = dma.hbm_to_vmem [thread:$0]  %s792_s2, 16, %s45_s15, [#allocation6]  }
  0x35   :  { %650 = dma.done.wait [#allocation3], 1024  }
  0x36   :  { %651 = vsyncadd [#allocation3], 4294966272 }
  0x37   :  { %652 = dma.done.wait [#allocation6], 272  }
  0x38   :  { %653 = vsyncadd [#allocation6], 4294967024  ;;  %v530_v0 = vld [vmem:[#allocation5] sm:$0xff]   ;;  %v531_v1 = vld [vmem:[#allocation5 + $0x8] sm:$0xff]   ;;  %vm137_vm0 = vcmask 261120   ;;  %s663_s2 = smov [#allocation8]  }
  0x39   :  { %497 = vmatprep.subr.bf16.mxu0 %v530_v0  ;;  %517 = vmatprep.subr.bf16.mxu1 %v530_v0  ;;  %v532_v2 = vld [vmem:[#allocation2] sm:$0xff]   ;;  %v534_v4 = vld [vmem:[#allocation2 + $0x8] sm:$0xff]   ;;  %v536_v6 = vld [vmem:[#allocation2 + $0x10] sm:$0xff]   ;;  %s360_s26 = sshll.u32 %s663_s2, 4  ;;  %s664_s29 = smov [#allocation9]   ;;  %s749_s26 = int_to_ptr.vmem [resolvable:$true] %s360_s26 }
  0x3a   :  { %498 = vmatpush3.bf16.msra.mxu0 %v530_v0  ;;  %519 = vmatpush3.bf16.msra.mxu1 %v530_v0  ;;  %v533_v3 = vld [vmem:[#allocation2 + $0x20] sm:$0xff]   ;;  %v535_v5 = vld [vmem:[#allocation2 + $0x28] sm:$0xff]   ;;  %v537_v7 = vld [vmem:[#allocation2 + $0x30] sm:$0xff]   ;;  %s372_s30 = sshll.u32 %s664_s29, 4  ;;  %s606_s5 = scalar_lea.vmem %s749_s26, 2048  ;;  %s751_s30 = int_to_ptr.vmem [resolvable:$true] %s372_s30 }
  0x3b   :  { %499 = vmatprep.subr.bf16.mxu0 %v531_v1  ;;  %518 = vmatprep.subr.bf16.mxu1 %v531_v1  ;;  %v538_v8 = vld [vmem:[#allocation2 + $0x18] sm:$0xff]   ;;  %v389_v10 = vld [vmem:[#allocation7] ss:$0 sm:$0xff]  ;;  %p607_p10 = scmp.ne.s32.totalorder %s749_s26, %s606_s5  ;;  %p611_p11 = scmp.lt.s32.totalorder %s749_s26, %s749_s26 }
  0x3c   :  { %501 = vmatprep.mubr.msk.bf16.mxu0 %vm137_vm0, %v532_v2  ;;  %509 = vmatprep.mubr.msk.bf16.mxu1 %vm137_vm0, %v533_v3  ;;  %v539_v9 = vld [vmem:[#allocation2 + $0x38] sm:$0xff]   ;;  %p612_p12 = scmp.lt.s32.totalorder %s606_s5, %s606_s5 }
  0x3e   :  { %500 = vmatpush3.bf16.msra.mxu0 %v531_v1  ;;  %520 = vmatpush3.bf16.msra.mxu1 %v531_v1  ;;  %p613_p13 = por %p612_p12, %p611_p11 }
  0x40   :  { %p614_p0 = pnand %p613_p13, %p607_p10 }
  0x41   :  { %502 = vmatmul.mubr.msk.bf16.vlgmr.msra.gmra.mrb[0].mxu0 %vm137_vm0, %v534_v4  ;;  %510 = vmatmul.mubr.msk.bf16.vlgmr.msra.gmra.mrb[0].mxu1 %vm137_vm0, %v535_v5 }
  0x42   :  { %505 = vmatprep.mubr.msk.bf16.mxu0 %vm137_vm0, %v536_v6  ;;  %513 = vmatprep.mubr.msk.bf16.mxu1 %vm137_vm0, %v537_v7 }
  0x49   :  { %506 = vmatmul.mubr.msk.bf16.gmra.mrb[4].mxu0 %vm137_vm0, %v538_v8  ;;  %514 = vmatmul.mubr.msk.bf16.gmra.mrb[4].mxu1 %vm137_vm0, %v539_v9 }
 0x114   :  { %v503_v11 = vpop.f32.mrb[0].mxu0  ;;  %v511_v12 = vpop.f32.mrb[0].mxu1 }
 0x115   :  { %v205_v13 = vadd.f32 %v503_v11, %v389_v10  ;;  %v237_v14 = vadd.f32 %v511_v12, %v389_v10  ;;  %v196_v15 = vpop.f32.mrb[1].mxu0  ;;  %v228_v16 = vpop.f32.mrb[1].mxu1 }
 0x116   :  { %v197_v17 = vadd.f32 %v389_v10, %v196_v15  ;;  %v229_v18 = vadd.f32 %v389_v10, %v228_v16  ;;  %v504_v19 = vpop.f32.mrb[2].mxu0  ;;  %v512_v20 = vpop.f32.mrb[2].mxu1 }
 0x117   :  { %261 = vst [vmem:[#allocation8 + $0x10] sm:$0xff] %v205_v13  ;;  %269 = vst [vmem:[#allocation8 + $0x50] sm:$0xff] %v237_v14  ;;  %v208_v21 = vadd.f32 %v504_v19, %v389_v10  ;;  %v240_v22 = vadd.f32 %v512_v20, %v389_v10  ;;  %v199_v23 = vpop.f32.mrb[3].mxu0  ;;  %v231_v24 = vpop.f32.mrb[3].mxu1 }
 0x118   :  { %259 = vst [vmem:[#allocation8] sm:$0xff] %v197_v17  ;;  %267 = vst [vmem:[#allocation8 + $0x40] sm:$0xff] %v229_v18  ;;  %v200_v25 = vadd.f32 %v389_v10, %v199_v23  ;;  %v232_v26 = vadd.f32 %v389_v10, %v231_v24 }
 0x119   :  { %262 = vst [vmem:[#allocation8 + $0x18] sm:$0xff] %v208_v21  ;;  %v448_v27 = vpack.c.bf16 %v208_v21, %v205_v13  ;;  %270 = vst [vmem:[#allocation8 + $0x58] sm:$0xff] %v240_v22  ;;  %v468_v28 = vpack.c.bf16 %v240_v22, %v237_v14 }
 0x11a   :  { %260 = vst [vmem:[#allocation8 + $0x8] sm:$0xff] %v200_v25  ;;  %v443_v29 = vpack.c.bf16 %v200_v25, %v197_v17  ;;  %268 = vst [vmem:[#allocation8 + $0x48] sm:$0xff] %v232_v26  ;;  %v463_v30 = vpack.c.bf16 %v232_v26, %v229_v18 }
 0x11b   :  { %480 = vst [vmem:[#allocation9 + $0x8] sm:$0xff] %v448_v27   ;;  %484 = vst [vmem:[#allocation9 + $0x28] sm:$0xff] %v468_v28  }
 0x11c   :  { %444 = vst [vmem:[#allocation9] sm:$0xff] %v443_v29   ;;  %483 = vst [vmem:[#allocation9 + $0x20] sm:$0xff] %v463_v30   ;;  %v507_v31 = vpop.f32.mrb[4].mxu0  ;;  %v515_v32 = vpop.f32.mrb[4].mxu1 }
 0x11d   :  { %v221_v33 = vadd.f32 %v507_v31, %v389_v10  ;;  %v253_v34 = vadd.f32 %v515_v32, %v389_v10  ;;  %v212_v35 = vpop.f32.mrb[5].mxu0  ;;  %v244_v36 = vpop.f32.mrb[5].mxu1 }
 0x11e   :  { %v213_v37 = vadd.f32 %v389_v10, %v212_v35  ;;  %v245_v38 = vadd.f32 %v389_v10, %v244_v36  ;;  %v508_v39 = vpop.f32.mrb[6].mxu0  ;;  %v516_v40 = vpop.f32.mrb[6].mxu1 }
 0x11f   :  { %265 = vst [vmem:[#allocation8 + $0x30] sm:$0xff] %v221_v33  ;;  %273 = vst [vmem:[#allocation8 + $0x70] sm:$0xff] %v253_v34  ;;  %v224_v41 = vadd.f32 %v508_v39, %v389_v10  ;;  %v256_v42 = vadd.f32 %v516_v40, %v389_v10  ;;  %v215_v43 = vpop.f32.mrb[7].mxu0  ;;  %v247_v44 = vpop.f32.mrb[7].mxu1 }
 0x120   :  { %263 = vst [vmem:[#allocation8 + $0x20] sm:$0xff] %v213_v37  ;;  %271 = vst [vmem:[#allocation8 + $0x60] sm:$0xff] %v245_v38  ;;  %v216_v45 = vadd.f32 %v389_v10, %v215_v43  ;;  %v248_v46 = vadd.f32 %v389_v10, %v247_v44 }
 0x121   :  { %266 = vst [vmem:[#allocation8 + $0x38] sm:$0xff] %v224_v41  ;;  %v458_v47 = vpack.c.bf16 %v224_v41, %v221_v33  ;;  %274 = vst [vmem:[#allocation8 + $0x78] sm:$0xff] %v256_v42  ;;  %v478_v48 = vpack.c.bf16 %v256_v42, %v253_v34 }
 0x122   :  { %264 = vst [vmem:[#allocation8 + $0x28] sm:$0xff] %v216_v45  ;;  %v453_v49 = vpack.c.bf16 %v216_v45, %v213_v37  ;;  %272 = vst [vmem:[#allocation8 + $0x68] sm:$0xff] %v248_v46  ;;  %v473_v50 = vpack.c.bf16 %v248_v46, %v245_v38 }
 0x123   :  { %482 = vst [vmem:[#allocation9 + $0x18] sm:$0xff] %v458_v47   ;;  %486 = vst [vmem:[#allocation9 + $0x38] sm:$0xff] %v478_v48  }
 0x124   :  { %617 = shalt.err (!%p614_p0)
}
 0x125   :  { %s618_s8 = scalar_lea.hbm %s793_s3, 2048 }
 0x126   :  { %p619_p1 = scmp.ne.s32.totalorder %s793_s3, %s618_s8  ;;  %p622_p2 = scmp.lt.u32.totalorder %s618_s8, %s793_s3 }
 0x128   :  { %p624_p3 = pnand %p622_p2, %p619_p1 }
 0x12a   :  { %627 = shalt.err (!%p624_p3)
}
 0x12b   :  { %s665_s1 = smov 128   ;;  %s666_s13 = smov 8   ;;  %481 = vst [vmem:[#allocation9 + $0x10] sm:$0xff] %v453_v49   ;;  %485 = vst [vmem:[#allocation9 + $0x30] sm:$0xff] %v473_v50  }
 0x12c   :  { %366 = dma.vmem_to_hbm [thread:$0]  %s749_s26, 2048, %s793_s3, [#allocation4], %s665_s1, %s665_s1, %s666_s13  }
 0x12d   :  { %s628_s16 = scalar_lea.vmem %s751_s30, 1024  ;;  %p633_p5 = scmp.lt.s32.totalorder %s751_s30, %s751_s30 }
 0x12e   :  { %p629_p4 = scmp.ne.s32.totalorder %s751_s30, %s628_s16  ;;  %p634_p6 = scmp.lt.s32.totalorder %s628_s16, %s628_s16 }
 0x130   :  { %p635_p7 = por %p634_p6, %p633_p5 }
 0x132   :  { %p636_p8 = pnand %p635_p7, %p629_p4 }
 0x134   :  { %639 = shalt.err (!%p636_p8)
}
 0x135   :  { %s640_s20 = scalar_lea.hbm %s794_s4, 1024 }
 0x136   :  { %p641_p9 = scmp.ne.s32.totalorder %s794_s4, %s640_s20  ;;  %p644_p10 = scmp.lt.u32.totalorder %s640_s20, %s794_s4 }
 0x138   :  { %p646_p11 = pnand %p644_p10, %p641_p9 }
 0x13a   :  { %649 = shalt.err (!%p646_p11)
}
 0x13b   :  { %378 = dma.vmem_to_hbm [thread:$0]  %s751_s30, 1024, %s794_s4, [#allocation10], %s660_s27, %s660_s27, %s661_s28  }
 0x13c   :  { %654 = dma.done.wait [#allocation4], 2048  }
 0x13d   :  { %655 = vsyncadd [#allocation4], 4294965248 }
 0x13e   :  { %656 = dma.done.wait [#allocation10], 1024  }
 0x13f   :  { %657 = vsyncadd [#allocation10], 4294966272 }
 0x140   :  { %385 = vsyncpa [#allocation3], 1 }
 0x141   :  { %386 = vsyncpa [#allocation6], 1 }
 0x142   :  { %387 = vsyncpa [#allocation4], 1 }
 0x143   :  { %388 = vsyncpa [#allocation10], 1 }

</bundles_post_ra>
